<compile_context>
chip_gen: v7x
topology: tpu7x:2x2x1
jax: 0.10.0
libtpu: 0.0.40
codegen_flags: <defaults>
</compile_context>

<pallas_src>
import functools

import jax
import jax.numpy as jnp
from jax import lax
from jax.experimental import pallas as pl
from jax.experimental.pallas import tpu as pltpu

LANES = 128  # lane-dense padded width for gates / classifier output


def gru_classifier_kernel(ids_ref, slab_ref, out_ref, *, T, B, H, VP):
    # ids_ref : (T*B, 1) int32  time-major flattened token ids
    # slab_ref: (VP+2H+2, 128) f32 packed parameters:
    #   rows [0, VP)        : gi table = emb @ [Wih_r^T|Wih_z^T|Wih_n^T] + b_gi
    #                         (lanes [0,3H) used; b_gi = [bihr+bhhr, bihz+bhhz, bihn])
    #   rows [VP, VP+H)     : Whh_cat = [Whh_r^T | Whh_z^T | Whh_n^T | 0]
    #   rows [VP+H, VP+2H)  : fc weight^T zero-padded to 128 lanes
    #   row  VP+2H          : fc bias (pad lanes = -1e30)
    #   row  VP+2H+1        : b_hh_n in lanes [0, H), rest 0
    # out_ref : (B, 128) f32  softmax probs (real classes in leading lanes)
    table = slab_ref[0:VP]                               # (VP, 128)
    whh = slab_ref[VP:VP + H]                            # (H, 128)
    wfc = slab_ref[VP + H:VP + 2 * H]                    # (H, 128)
    bfc = slab_ref[VP + 2 * H:VP + 2 * H + 1]            # (1, 128)
    bhn = slab_ref[VP + 2 * H + 1:VP + 2 * H + 2, 0:H]   # (1, H)

    # ---- fused gather + input projection: ONE MXU pass for all T*B rows ----
    ids = ids_ref[...]                                   # (TB, 1)
    v_iota = lax.broadcasted_iota(jnp.int32, (T * B, VP), 1)
    onehot = (v_iota == ids).astype(jnp.float32)         # (TB, VP)
    gi_all = jnp.dot(onehot, table,
                     preferred_element_type=jnp.float32)  # (TB, 128), biases folded

    # ---- recurrence: fully unrolled; one fused h @ Whh_cat matmul per step ----
    h = jnp.zeros((B, H), jnp.float32)
    for t in range(T):
        lo = t * B
        gi = gi_all[lo:lo + B]                           # (B, 128)
        gh = jnp.dot(h, whh,
                     preferred_element_type=jnp.float32)  # (B, 128)
        s = gi + gh                                      # single vreg add
        r = jax.nn.sigmoid(s[:, 0:H])
        z = jax.nn.sigmoid(s[:, H:2 * H])
        n = jnp.tanh(gi[:, 2 * H:3 * H] + r * (gh[:, 2 * H:3 * H] + bhn))
        h = n + z * (h - n)                              # == (1-z)*n + z*h

    # ---- classifier head + stable softmax into a lane-dense block ----
    logits = jnp.dot(h, wfc, preferred_element_type=jnp.float32) + bfc  # (B, 128)
    m = jnp.max(logits, axis=1, keepdims=True)
    e = jnp.exp(logits - m)                  # padded lanes: exp(-huge) == 0
    ssum = jnp.sum(e, axis=1, keepdims=True)
    inv = pl.reciprocal(ssum, approx=True)   # EUP slot
    inv = inv * (2.0 - ssum * inv)           # one Newton step -> f32 accuracy
    out_ref[...] = e * inv


def pack_rnn_params(params):
    """One-time (model-load) repacking of all parameters into a single slab."""
    emb = params["embedding"].astype(jnp.float32)         # (V, E)
    w_ih = params["w_ih"].astype(jnp.float32)             # (3H, E)
    w_hh = params["w_hh"].astype(jnp.float32)             # (3H, H)
    H = w_hh.shape[1]
    V = emb.shape[0]
    b_ih = params["b_ih"].astype(jnp.float32).reshape(3, H)
    b_hh = params["b_hh"].astype(jnp.float32).reshape(3, H)
    fc_w = params["fc_w"].astype(jnp.float32)              # (O, H)
    fc_b = params["fc_b"].astype(jnp.float32)              # (O,)
    O = fc_b.shape[0]

    VP = ((V + 7) // 8) * 8                                # sublane-aligned vocab rows
    assert H % 8 == 0 and 3 * H <= LANES and O <= LANES

    # Per-gate W_ih^T / W_hh^T concatenated gate-contiguous along lanes.
    wih_cat = jnp.concatenate([w_ih[g * H:(g + 1) * H, :].T for g in range(3)],
                              axis=1)                       # (E, 3H)
    whh_cat = jnp.concatenate([w_hh[g * H:(g + 1) * H, :].T for g in range(3)],
                              axis=1)                       # (H, 3H)
    # Biases folded into the hoisted input projection (n gate keeps only b_ih_n;
    # b_hh_n stays inside r*(...) per the GRU definition).
    b_gi = jnp.concatenate([b_ih[0] + b_hh[0], b_ih[1] + b_hh[1], b_ih[2]])  # (3H,)

    table = emb @ wih_cat + b_gi[None, :]                   # (V, 3H)
    table_pad = jnp.zeros((VP, LANES), jnp.float32).at[:V, :3 * H].set(table)
    whh_pad = jnp.zeros((H, LANES), jnp.float32).at[:, :3 * H].set(whh_cat)
    wfc_pad = jnp.zeros((H, LANES), jnp.float32).at[:, :O].set(fc_w.T)
    bfc_pad = jnp.full((1, LANES), -1e30, jnp.float32).at[0, :O].set(fc_b)
    bhn_pad = jnp.zeros((1, LANES), jnp.float32).at[0, :H].set(b_hh[2])

    slab = jnp.concatenate([table_pad, whh_pad, wfc_pad, bfc_pad, bhn_pad],
                           axis=0)                          # (VP+2H+2, 128)
    return {"slab": slab, "H": int(H), "VP": int(VP), "O": int(O)}


@functools.partial(jax.jit, static_argnums=(2, 3, 4))
def _forward_jit(x_ids, slab, H, VP, O):
    B, T = x_ids.shape
    # Time-major flattened token ids; row t*B + b == x_ids[b, t]
    ids_tm = x_ids.astype(jnp.int32).T.reshape(T * B, 1)
    kernel = functools.partial(gru_classifier_kernel, T=T, B=B, H=H, VP=VP)
    vmem = pl.BlockSpec(memory_space=pltpu.MemorySpace.VMEM)
    probs_pad = pl.pallas_call(
        kernel,
        out_shape=jax.ShapeDtypeStruct((B, LANES), jnp.float32),
        in_specs=[vmem, vmem],
        out_specs=vmem,
    )(ids_tm, slab)
    return probs_pad[:, :O]


def rnn_classifier_forward(x_ids, packed):
    """x_ids: (B, T) int32 token ids. packed: output of pack_rnn_params (done once)."""
    return _forward_jit(x_ids, packed["slab"], packed["H"], packed["VP"], packed["O"])


def reference_forward(x_ids, params):
    """Pure-JAX reference mirroring torch.nn.GRU semantics (gate order r,z,n)."""
    emb = params["embedding"]
    embedded = jnp.take(emb, x_ids, axis=0)                 # (B, T, E)
    H = params["w_hh"].shape[1]
    B, T, _ = embedded.shape
    h = jnp.zeros((B, H), jnp.float32)
    for t in range(T):
        x_t = embedded[:, t, :]
        gi = x_t @ params["w_ih"].T + params["b_ih"]
        gh = h @ params["w_hh"].T + params["b_hh"]
        r = jax.nn.sigmoid(gi[:, 0:H] + gh[:, 0:H])
        z = jax.nn.sigmoid(gi[:, H:2 * H] + gh[:, H:2 * H])
        n = jnp.tanh(gi[:, 2 * H:] + r * gh[:, 2 * H:])
        h = (1.0 - z) * n + z * h
    logits = h @ params["fc_w"].T + params["fc_b"]
    return jax.nn.softmax(logits, axis=1)


if __name__ == "__main__":
    # Shapes implied by the module: vocab = 26 letters + space = 27,
    # embedding_size=32, hidden_size=32, output_size=2 (vowel/consonant),
    # batch=2, context_length(seq)=8.
    V, E, H, O = 27, 32, 32, 2
    B, T = 2, 8

    key = jax.random.PRNGKey(0)
    ks = jax.random.split(key, 8)
    params = {
        "embedding": 0.1 * jax.random.normal(ks[0], (V, E), jnp.float32),
        "w_ih": 0.1 * jax.random.normal(ks[1], (3 * H, E), jnp.float32),
        "w_hh": 0.1 * jax.random.normal(ks[2], (3 * H, H), jnp.float32),
        "b_ih": 0.1 * jax.random.normal(ks[3], (3 * H,), jnp.float32),
        "b_hh": 0.1 * jax.random.normal(ks[4], (3 * H,), jnp.float32),
        "fc_w": 0.1 * jax.random.normal(ks[5], (O, H), jnp.float32),
        "fc_b": 0.1 * jax.random.normal(ks[6], (O,), jnp.float32),
    }
    x_ids = jax.random.randint(ks[7], (B, T), 0, V, dtype=jnp.int32)

    packed = jax.tree_util.tree_map(
        lambda x: jax.block_until_ready(x) if isinstance(x, jax.Array) else x,
        pack_rnn_params(params))  # one-time, outside the per-call path

    out = rnn_classifier_forward(x_ids, packed)
    out = jax.block_until_ready(out)

    ref = reference_forward(x_ids, params)
    assert out.shape == (B, O)
    assert jnp.allclose(out, ref, atol=1e-5, rtol=1e-5), (out, ref)
    print("KERNEL_OK")
</pallas_src>

<mosaic_0001>
module attributes {stable_mosaic.version = 11 : i64} {
  func.func @gru_classifier_kernel(%arg0: memref<16x1xi32, #tpu.memory_space<vmem>>, %arg1: memref<98x128xf32, #tpu.memory_space<vmem>>, %arg2: memref<2x128xf32, #tpu.memory_space<vmem>>) attributes {dimension_semantics = [], scalar_prefetch = 0 : i64, scratch_operands = 0 : i64, tpu.core_type = #tpu.core_type<tc>} {
    %c0 = arith.constant 0 : index
    %c0_0 = arith.constant 0 : index
    %0 = vector.load %arg1[%c0, %c0_0] : memref<98x128xf32, #tpu.memory_space<vmem>>, vector<32x128xf32>
    %c32 = arith.constant 32 : index
    %c0_1 = arith.constant 0 : index
    %1 = vector.load %arg1[%c32, %c0_1] : memref<98x128xf32, #tpu.memory_space<vmem>>, vector<32x128xf32>
    %c64 = arith.constant 64 : index
    %c0_2 = arith.constant 0 : index
    %2 = vector.load %arg1[%c64, %c0_2] : memref<98x128xf32, #tpu.memory_space<vmem>>, vector<32x128xf32>
    %c96 = arith.constant 96 : index
    %c0_3 = arith.constant 0 : index
    %3 = vector.load %arg1[%c96, %c0_3] : memref<98x128xf32, #tpu.memory_space<vmem>>, vector<1x128xf32>
    %c97 = arith.constant 97 : index
    %c0_4 = arith.constant 0 : index
    %4 = vector.load %arg1[%c97, %c0_4] : memref<98x128xf32, #tpu.memory_space<vmem>>, vector<1x32xf32>
    %c0_5 = arith.constant 0 : index
    %c0_6 = arith.constant 0 : index
    %5 = vector.load %arg0[%c0_5, %c0_6] : memref<16x1xi32, #tpu.memory_space<vmem>>, vector<16x1xi32>
    %6 = tpu.iota {dimensions = array<i32: 1>} : vector<16x32xi32>
    %7 = vector.broadcast %5 : vector<16x1xi32> to vector<16x32xi32>
    %8 = arith.cmpi eq, %6, %7 : vector<16x32xi32>
    %9 = arith.extui %8 : vector<16x32xi1> to vector<16x32xi32>
    %10 = arith.sitofp %9 : vector<16x32xi32> to vector<16x32xf32>
    %cst = arith.constant dense<0.000000e+00> : vector<16x128xf32>
    %11 = tpu.matmul %10, %0, %cst {dimension_numbers = #tpu.dot_dimension_numbers<[1], [0], [0], [1], [0, 0, 1, 1], [], []>} : vector<16x32xf32>, vector<32x128xf32>, vector<16x128xf32> -> vector<16x128xf32>
    %cst_7 = arith.constant 0.000000e+00 : f32
    %12 = vector.broadcast %cst_7 : f32 to vector<2x32xf32>
    %13 = vector.extract_strided_slice %11 {offsets = [0, 0], sizes = [2, 128], strides = [1, 1]} : vector<16x128xf32> to vector<2x128xf32>
    %cst_8 = arith.constant dense<0.000000e+00> : vector<2x128xf32>
    %14 = tpu.matmul %12, %1, %cst_8 {dimension_numbers = #tpu.dot_dimension_numbers<[1], [0], [0], [1], [0, 0, 1, 1], [], []>} : vector<2x32xf32>, vector<32x128xf32>, vector<2x128xf32> -> vector<2x128xf32>
    %15 = arith.addf %13, %14 : vector<2x128xf32>
    %16 = vector.extract_strided_slice %15 {offsets = [0, 0], sizes = [2, 32], strides = [1, 1]} : vector<2x128xf32> to vector<2x32xf32>
    %17 = arith.negf %16 : vector<2x32xf32>
    %18 = math.exp %17 : vector<2x32xf32>
    %cst_9 = arith.constant 1.000000e+00 : f32
    %19 = vector.broadcast %cst_9 : f32 to vector<2x32xf32>
    %20 = arith.addf %19, %18 : vector<2x32xf32>
    %21 = arith.divf %19, %20 : vector<2x32xf32>
    %22 = vector.extract_strided_slice %15 {offsets = [0, 32], sizes = [2, 32], strides = [1, 1]} : vector<2x128xf32> to vector<2x32xf32>
    %23 = arith.negf %22 : vector<2x32xf32>
    %24 = math.exp %23 : vector<2x32xf32>
    %cst_10 = arith.constant 1.000000e+00 : f32
    %25 = vector.broadcast %cst_10 : f32 to vector<2x32xf32>
    %26 = arith.addf %25, %24 : vector<2x32xf32>
    %27 = arith.divf %25, %26 : vector<2x32xf32>
    %28 = vector.extract_strided_slice %13 {offsets = [0, 64], sizes = [2, 32], strides = [1, 1]} : vector<2x128xf32> to vector<2x32xf32>
    %29 = vector.extract_strided_slice %14 {offsets = [0, 64], sizes = [2, 32], strides = [1, 1]} : vector<2x128xf32> to vector<2x32xf32>
    %30 = vector.broadcast %4 : vector<1x32xf32> to vector<2x32xf32>
    %31 = arith.addf %29, %30 : vector<2x32xf32>
    %32 = arith.mulf %21, %31 : vector<2x32xf32>
    %33 = arith.addf %28, %32 : vector<2x32xf32>
    %34 = math.tanh %33 : vector<2x32xf32>
    %35 = arith.subf %12, %34 : vector<2x32xf32>
    %36 = arith.mulf %27, %35 : vector<2x32xf32>
    %37 = arith.addf %34, %36 : vector<2x32xf32>
    %38 = vector.extract_strided_slice %11 {offsets = [2, 0], sizes = [2, 128], strides = [1, 1]} : vector<16x128xf32> to vector<2x128xf32>
    %cst_11 = arith.constant dense<0.000000e+00> : vector<2x128xf32>
    %39 = tpu.matmul %37, %1, %cst_11 {dimension_numbers = #tpu.dot_dimension_numbers<[1], [0], [0], [1], [0, 0, 1, 1], [], []>} : vector<2x32xf32>, vector<32x128xf32>, vector<2x128xf32> -> vector<2x128xf32>
    %40 = arith.addf %38, %39 : vector<2x128xf32>
    %41 = vector.extract_strided_slice %40 {offsets = [0, 0], sizes = [2, 32], strides = [1, 1]} : vector<2x128xf32> to vector<2x32xf32>
    %42 = arith.negf %41 : vector<2x32xf32>
    %43 = math.exp %42 : vector<2x32xf32>
    %cst_12 = arith.constant 1.000000e+00 : f32
    %44 = vector.broadcast %cst_12 : f32 to vector<2x32xf32>
    %45 = arith.addf %44, %43 : vector<2x32xf32>
    %46 = arith.divf %44, %45 : vector<2x32xf32>
    %47 = vector.extract_strided_slice %40 {offsets = [0, 32], sizes = [2, 32], strides = [1, 1]} : vector<2x128xf32> to vector<2x32xf32>
    %48 = arith.negf %47 : vector<2x32xf32>
    %49 = math.exp %48 : vector<2x32xf32>
    %cst_13 = arith.constant 1.000000e+00 : f32
    %50 = vector.broadcast %cst_13 : f32 to vector<2x32xf32>
    %51 = arith.addf %50, %49 : vector<2x32xf32>
    %52 = arith.divf %50, %51 : vector<2x32xf32>
    %53 = vector.extract_strided_slice %38 {offsets = [0, 64], sizes = [2, 32], strides = [1, 1]} : vector<2x128xf32> to vector<2x32xf32>
    %54 = vector.extract_strided_slice %39 {offsets = [0, 64], sizes = [2, 32], strides = [1, 1]} : vector<2x128xf32> to vector<2x32xf32>
    %55 = vector.broadcast %4 : vector<1x32xf32> to vector<2x32xf32>
    %56 = arith.addf %54, %55 : vector<2x32xf32>
    %57 = arith.mulf %46, %56 : vector<2x32xf32>
    %58 = arith.addf %53, %57 : vector<2x32xf32>
    %59 = math.tanh %58 : vector<2x32xf32>
    %60 = arith.subf %37, %59 : vector<2x32xf32>
    %61 = arith.mulf %52, %60 : vector<2x32xf32>
    %62 = arith.addf %59, %61 : vector<2x32xf32>
    %63 = vector.extract_strided_slice %11 {offsets = [4, 0], sizes = [2, 128], strides = [1, 1]} : vector<16x128xf32> to vector<2x128xf32>
    %cst_14 = arith.constant dense<0.000000e+00> : vector<2x128xf32>
    %64 = tpu.matmul %62, %1, %cst_14 {dimension_numbers = #tpu.dot_dimension_numbers<[1], [0], [0], [1], [0, 0, 1, 1], [], []>} : vector<2x32xf32>, vector<32x128xf32>, vector<2x128xf32> -> vector<2x128xf32>
    %65 = arith.addf %63, %64 : vector<2x128xf32>
    %66 = vector.extract_strided_slice %65 {offsets = [0, 0], sizes = [2, 32], strides = [1, 1]} : vector<2x128xf32> to vector<2x32xf32>
    %67 = arith.negf %66 : vector<2x32xf32>
    %68 = math.exp %67 : vector<2x32xf32>
    %cst_15 = arith.constant 1.000000e+00 : f32
    %69 = vector.broadcast %cst_15 : f32 to vector<2x32xf32>
    %70 = arith.addf %69, %68 : vector<2x32xf32>
    %71 = arith.divf %69, %70 : vector<2x32xf32>
    %72 = vector.extract_strided_slice %65 {offsets = [0, 32], sizes = [2, 32], strides = [1, 1]} : vector<2x128xf32> to vector<2x32xf32>
    %73 = arith.negf %72 : vector<2x32xf32>
    %74 = math.exp %73 : vector<2x32xf32>
    %cst_16 = arith.constant 1.000000e+00 : f32
    %75 = vector.broadcast %cst_16 : f32 to vector<2x32xf32>
    %76 = arith.addf %75, %74 : vector<2x32xf32>
    %77 = arith.divf %75, %76 : vector<2x32xf32>
    %78 = vector.extract_strided_slice %63 {offsets = [0, 64], sizes = [2, 32], strides = [1, 1]} : vector<2x128xf32> to vector<2x32xf32>
    %79 = vector.extract_strided_slice %64 {offsets = [0, 64], sizes = [2, 32], strides = [1, 1]} : vector<2x128xf32> to vector<2x32xf32>
    %80 = vector.broadcast %4 : vector<1x32xf32> to vector<2x32xf32>
    %81 = arith.addf %79, %80 : vector<2x32xf32>
    %82 = arith.mulf %71, %81 : vector<2x32xf32>
    %83 = arith.addf %78, %82 : vector<2x32xf32>
    %84 = math.tanh %83 : vector<2x32xf32>
    %85 = arith.subf %62, %84 : vector<2x32xf32>
    %86 = arith.mulf %77, %85 : vector<2x32xf32>
    %87 = arith.addf %84, %86 : vector<2x32xf32>
    %88 = vector.extract_strided_slice %11 {offsets = [6, 0], sizes = [2, 128], strides = [1, 1]} : vector<16x128xf32> to vector<2x128xf32>
    %cst_17 = arith.constant dense<0.000000e+00> : vector<2x128xf32>
    %89 = tpu.matmul %87, %1, %cst_17 {dimension_numbers = #tpu.dot_dimension_numbers<[1], [0], [0], [1], [0, 0, 1, 1], [], []>} : vector<2x32xf32>, vector<32x128xf32>, vector<2x128xf32> -> vector<2x128xf32>
    %90 = arith.addf %88, %89 : vector<2x128xf32>
    %91 = vector.extract_strided_slice %90 {offsets = [0, 0], sizes = [2, 32], strides = [1, 1]} : vector<2x128xf32> to vector<2x32xf32>
    %92 = arith.negf %91 : vector<2x32xf32>
    %93 = math.exp %92 : vector<2x32xf32>
    %cst_18 = arith.constant 1.000000e+00 : f32
    %94 = vector.broadcast %cst_18 : f32 to vector<2x32xf32>
    %95 = arith.addf %94, %93 : vector<2x32xf32>
    %96 = arith.divf %94, %95 : vector<2x32xf32>
    %97 = vector.extract_strided_slice %90 {offsets = [0, 32], sizes = [2, 32], strides = [1, 1]} : vector<2x128xf32> to vector<2x32xf32>
    %98 = arith.negf %97 : vector<2x32xf32>
    %99 = math.exp %98 : vector<2x32xf32>
    %cst_19 = arith.constant 1.000000e+00 : f32
    %100 = vector.broadcast %cst_19 : f32 to vector<2x32xf32>
    %101 = arith.addf %100, %99 : vector<2x32xf32>
    %102 = arith.divf %100, %101 : vector<2x32xf32>
    %103 = vector.extract_strided_slice %88 {offsets = [0, 64], sizes = [2, 32], strides = [1, 1]} : vector<2x128xf32> to vector<2x32xf32>
    %104 = vector.extract_strided_slice %89 {offsets = [0, 64], sizes = [2, 32], strides = [1, 1]} : vector<2x128xf32> to vector<2x32xf32>
    %105 = vector.broadcast %4 : vector<1x32xf32> to vector<2x32xf32>
    %106 = arith.addf %104, %105 : vector<2x32xf32>
    %107 = arith.mulf %96, %106 : vector<2x32xf32>
    %108 = arith.addf %103, %107 : vector<2x32xf32>
    %109 = math.tanh %108 : vector<2x32xf32>
    %110 = arith.subf %87, %109 : vector<2x32xf32>
    %111 = arith.mulf %102, %110 : vector<2x32xf32>
    %112 = arith.addf %109, %111 : vector<2x32xf32>
    %113 = vector.extract_strided_slice %11 {offsets = [8, 0], sizes = [2, 128], strides = [1, 1]} : vector<16x128xf32> to vector<2x128xf32>
    %cst_20 = arith.constant dense<0.000000e+00> : vector<2x128xf32>
    %114 = tpu.matmul %112, %1, %cst_20 {dimension_numbers = #tpu.dot_dimension_numbers<[1], [0], [0], [1], [0, 0, 1, 1], [], []>} : vector<2x32xf32>, vector<32x128xf32>, vector<2x128xf32> -> vector<2x128xf32>
    %115 = arith.addf %113, %114 : vector<2x128xf32>
    %116 = vector.extract_strided_slice %115 {offsets = [0, 0], sizes = [2, 32], strides = [1, 1]} : vector<2x128xf32> to vector<2x32xf32>
    %117 = arith.negf %116 : vector<2x32xf32>
    %118 = math.exp %117 : vector<2x32xf32>
    %cst_21 = arith.constant 1.000000e+00 : f32
    %119 = vector.broadcast %cst_21 : f32 to vector<2x32xf32>
    %120 = arith.addf %119, %118 : vector<2x32xf32>
    %121 = arith.divf %119, %120 : vector<2x32xf32>
    %122 = vector.extract_strided_slice %115 {offsets = [0, 32], sizes = [2, 32], strides = [1, 1]} : vector<2x128xf32> to vector<2x32xf32>
    %123 = arith.negf %122 : vector<2x32xf32>
    %124 = math.exp %123 : vector<2x32xf32>
    %cst_22 = arith.constant 1.000000e+00 : f32
    %125 = vector.broadcast %cst_22 : f32 to vector<2x32xf32>
    %126 = arith.addf %125, %124 : vector<2x32xf32>
    %127 = arith.divf %125, %126 : vector<2x32xf32>
    %128 = vector.extract_strided_slice %113 {offsets = [0, 64], sizes = [2, 32], strides = [1, 1]} : vector<2x128xf32> to vector<2x32xf32>
    %129 = vector.extract_strided_slice %114 {offsets = [0, 64], sizes = [2, 32], strides = [1, 1]} : vector<2x128xf32> to vector<2x32xf32>
    %130 = vector.broadcast %4 : vector<1x32xf32> to vector<2x32xf32>
    %131 = arith.addf %129, %130 : vector<2x32xf32>
    %132 = arith.mulf %121, %131 : vector<2x32xf32>
    %133 = arith.addf %128, %132 : vector<2x32xf32>
    %134 = math.tanh %133 : vector<2x32xf32>
    %135 = arith.subf %112, %134 : vector<2x32xf32>
    %136 = arith.mulf %127, %135 : vector<2x32xf32>
    %137 = arith.addf %134, %136 : vector<2x32xf32>
    %138 = vector.extract_strided_slice %11 {offsets = [10, 0], sizes = [2, 128], strides = [1, 1]} : vector<16x128xf32> to vector<2x128xf32>
    %cst_23 = arith.constant dense<0.000000e+00> : vector<2x128xf32>
    %139 = tpu.matmul %137, %1, %cst_23 {dimension_numbers = #tpu.dot_dimension_numbers<[1], [0], [0], [1], [0, 0, 1, 1], [], []>} : vector<2x32xf32>, vector<32x128xf32>, vector<2x128xf32> -> vector<2x128xf32>
    %140 = arith.addf %138, %139 : vector<2x128xf32>
    %141 = vector.extract_strided_slice %140 {offsets = [0, 0], sizes = [2, 32], strides = [1, 1]} : vector<2x128xf32> to vector<2x32xf32>
    %142 = arith.negf %141 : vector<2x32xf32>
    %143 = math.exp %142 : vector<2x32xf32>
    %cst_24 = arith.constant 1.000000e+00 : f32
    %144 = vector.broadcast %cst_24 : f32 to vector<2x32xf32>
    %145 = arith.addf %144, %143 : vector<2x32xf32>
    %146 = arith.divf %144, %145 : vector<2x32xf32>
    %147 = vector.extract_strided_slice %140 {offsets = [0, 32], sizes = [2, 32], strides = [1, 1]} : vector<2x128xf32> to vector<2x32xf32>
    %148 = arith.negf %147 : vector<2x32xf32>
    %149 = math.exp %148 : vector<2x32xf32>
    %cst_25 = arith.constant 1.000000e+00 : f32
    %150 = vector.broadcast %cst_25 : f32 to vector<2x32xf32>
    %151 = arith.addf %150, %149 : vector<2x32xf32>
    %152 = arith.divf %150, %151 : vector<2x32xf32>
    %153 = vector.extract_strided_slice %138 {offsets = [0, 64], sizes = [2, 32], strides = [1, 1]} : vector<2x128xf32> to vector<2x32xf32>
    %154 = vector.extract_strided_slice %139 {offsets = [0, 64], sizes = [2, 32], strides = [1, 1]} : vector<2x128xf32> to vector<2x32xf32>
    %155 = vector.broadcast %4 : vector<1x32xf32> to vector<2x32xf32>
    %156 = arith.addf %154, %155 : vector<2x32xf32>
    %157 = arith.mulf %146, %156 : vector<2x32xf32>
    %158 = arith.addf %153, %157 : vector<2x32xf32>
    %159 = math.tanh %158 : vector<2x32xf32>
    %160 = arith.subf %137, %159 : vector<2x32xf32>
    %161 = arith.mulf %152, %160 : vector<2x32xf32>
    %162 = arith.addf %159, %161 : vector<2x32xf32>
    %163 = vector.extract_strided_slice %11 {offsets = [12, 0], sizes = [2, 128], strides = [1, 1]} : vector<16x128xf32> to vector<2x128xf32>
    %cst_26 = arith.constant dense<0.000000e+00> : vector<2x128xf32>
    %164 = tpu.matmul %162, %1, %cst_26 {dimension_numbers = #tpu.dot_dimension_numbers<[1], [0], [0], [1], [0, 0, 1, 1], [], []>} : vector<2x32xf32>, vector<32x128xf32>, vector<2x128xf32> -> vector<2x128xf32>
    %165 = arith.addf %163, %164 : vector<2x128xf32>
    %166 = vector.extract_strided_slice %165 {offsets = [0, 0], sizes = [2, 32], strides = [1, 1]} : vector<2x128xf32> to vector<2x32xf32>
    %167 = arith.negf %166 : vector<2x32xf32>
    %168 = math.exp %167 : vector<2x32xf32>
    %cst_27 = arith.constant 1.000000e+00 : f32
    %169 = vector.broadcast %cst_27 : f32 to vector<2x32xf32>
    %170 = arith.addf %169, %168 : vector<2x32xf32>
    %171 = arith.divf %169, %170 : vector<2x32xf32>
    %172 = vector.extract_strided_slice %165 {offsets = [0, 32], sizes = [2, 32], strides = [1, 1]} : vector<2x128xf32> to vector<2x32xf32>
    %173 = arith.negf %172 : vector<2x32xf32>
    %174 = math.exp %173 : vector<2x32xf32>
    %cst_28 = arith.constant 1.000000e+00 : f32
    %175 = vector.broadcast %cst_28 : f32 to vector<2x32xf32>
    %176 = arith.addf %175, %174 : vector<2x32xf32>
    %177 = arith.divf %175, %176 : vector<2x32xf32>
    %178 = vector.extract_strided_slice %163 {offsets = [0, 64], sizes = [2, 32], strides = [1, 1]} : vector<2x128xf32> to vector<2x32xf32>
    %179 = vector.extract_strided_slice %164 {offsets = [0, 64], sizes = [2, 32], strides = [1, 1]} : vector<2x128xf32> to vector<2x32xf32>
    %180 = vector.broadcast %4 : vector<1x32xf32> to vector<2x32xf32>
    %181 = arith.addf %179, %180 : vector<2x32xf32>
    %182 = arith.mulf %171, %181 : vector<2x32xf32>
    %183 = arith.addf %178, %182 : vector<2x32xf32>
    %184 = math.tanh %183 : vector<2x32xf32>
    %185 = arith.subf %162, %184 : vector<2x32xf32>
    %186 = arith.mulf %177, %185 : vector<2x32xf32>
    %187 = arith.addf %184, %186 : vector<2x32xf32>
    %188 = vector.extract_strided_slice %11 {offsets = [14, 0], sizes = [2, 128], strides = [1, 1]} : vector<16x128xf32> to vector<2x128xf32>
    %cst_29 = arith.constant dense<0.000000e+00> : vector<2x128xf32>
    %189 = tpu.matmul %187, %1, %cst_29 {dimension_numbers = #tpu.dot_dimension_numbers<[1], [0], [0], [1], [0, 0, 1, 1], [], []>} : vector<2x32xf32>, vector<32x128xf32>, vector<2x128xf32> -> vector<2x128xf32>
    %190 = arith.addf %188, %189 : vector<2x128xf32>
    %191 = vector.extract_strided_slice %190 {offsets = [0, 0], sizes = [2, 32], strides = [1, 1]} : vector<2x128xf32> to vector<2x32xf32>
    %192 = arith.negf %191 : vector<2x32xf32>
    %193 = math.exp %192 : vector<2x32xf32>
    %cst_30 = arith.constant 1.000000e+00 : f32
    %194 = vector.broadcast %cst_30 : f32 to vector<2x32xf32>
    %195 = arith.addf %194, %193 : vector<2x32xf32>
    %196 = arith.divf %194, %195 : vector<2x32xf32>
    %197 = vector.extract_strided_slice %190 {offsets = [0, 32], sizes = [2, 32], strides = [1, 1]} : vector<2x128xf32> to vector<2x32xf32>
    %198 = arith.negf %197 : vector<2x32xf32>
    %199 = math.exp %198 : vector<2x32xf32>
    %cst_31 = arith.constant 1.000000e+00 : f32
    %200 = vector.broadcast %cst_31 : f32 to vector<2x32xf32>
    %201 = arith.addf %200, %199 : vector<2x32xf32>
    %202 = arith.divf %200, %201 : vector<2x32xf32>
    %203 = vector.extract_strided_slice %188 {offsets = [0, 64], sizes = [2, 32], strides = [1, 1]} : vector<2x128xf32> to vector<2x32xf32>
    %204 = vector.extract_strided_slice %189 {offsets = [0, 64], sizes = [2, 32], strides = [1, 1]} : vector<2x128xf32> to vector<2x32xf32>
    %205 = vector.broadcast %4 : vector<1x32xf32> to vector<2x32xf32>
    %206 = arith.addf %204, %205 : vector<2x32xf32>
    %207 = arith.mulf %196, %206 : vector<2x32xf32>
    %208 = arith.addf %203, %207 : vector<2x32xf32>
    %209 = math.tanh %208 : vector<2x32xf32>
    %210 = arith.subf %187, %209 : vector<2x32xf32>
    %211 = arith.mulf %202, %210 : vector<2x32xf32>
    %212 = arith.addf %209, %211 : vector<2x32xf32>
    %cst_32 = arith.constant dense<0.000000e+00> : vector<2x128xf32>
    %213 = tpu.matmul %212, %2, %cst_32 {dimension_numbers = #tpu.dot_dimension_numbers<[1], [0], [0], [1], [0, 0, 1, 1], [], []>} : vector<2x32xf32>, vector<32x128xf32>, vector<2x128xf32> -> vector<2x128xf32>
    %214 = vector.broadcast %3 : vector<1x128xf32> to vector<2x128xf32>
    %215 = arith.addf %213, %214 : vector<2x128xf32>
    %cst_33 = arith.constant dense<0xFF800000> : vector<2xf32>
    %216 = vector.multi_reduction <maximumf>, %215, %cst_33 [1] : vector<2x128xf32> to vector<2xf32>
    %217 = vector.shape_cast %216 : vector<2xf32> to vector<2x1xf32>
    %218 = vector.broadcast %217 : vector<2x1xf32> to vector<2x128xf32>
    %219 = arith.subf %215, %218 : vector<2x128xf32>
    %220 = math.exp %219 : vector<2x128xf32>
    %cst_34 = arith.constant dense<0.000000e+00> : vector<2xf32>
    %221 = vector.multi_reduction <add>, %220, %cst_34 [1] : vector<2x128xf32> to vector<2xf32>
    %222 = vector.shape_cast %221 : vector<2xf32> to vector<2x1xf32>
    %223 = tpu.reciprocal %222 {approx = true} : vector<2x1xf32> -> vector<2x1xf32>
    %224 = arith.mulf %222, %223 : vector<2x1xf32>
    %cst_35 = arith.constant 2.000000e+00 : f32
    %225 = vector.broadcast %cst_35 : f32 to vector<2x1xf32>
    %226 = arith.subf %225, %224 : vector<2x1xf32>
    %227 = arith.mulf %223, %226 : vector<2x1xf32>
    %228 = vector.broadcast %227 : vector<2x1xf32> to vector<2x128xf32>
    %229 = arith.mulf %220, %228 : vector<2x128xf32>
    %c0_36 = arith.constant 0 : index
    %c0_37 = arith.constant 0 : index
    %230 = vector.load %arg2[%c0_36, %c0_37] : memref<2x128xf32, #tpu.memory_space<vmem>>, vector<2x128xf32>
    tpu.vector_store %arg2[%c0_36, %c0_37], %229 {strides = array<i32>} : memref<2x128xf32, #tpu.memory_space<vmem>>, vector<2x128xf32>,
    return
  }
}

</mosaic_0001>

<bundles_post_ra>
// kernel: _forward_jit.1
= control target key start
LH: loop header
LB: loop body
LE: loop exit
PB: predicated region body
PF: predicated region fallthrough
CT: control target
= control target key end

     0   :  { %7 = vsyncpa [#allocation3], 0  ;;  %s1705_s0 = inlined_call_operand.vmem [shape: s32[16,1], index: 0, kind: input, shape index: {}]   ;;  %s1706_s1 = inlined_call_operand.hbm [shape: f32[98,128], index: 1, kind: input, shape index: {}]   ;;  %s1707_s2 = inlined_call_operand.hbm [shape: f32[2,128], index: 2, kind: output, shape index: {}]  }
   0x1   :  { %8 = vsyncpa [#allocation4], 0  ;;  %s1509_s9 = smov [#allocation2]   ;;  %s1461_s13 = scalar_lea.hbm %s1706_s1, 1664 }
   0x2   :  { %s16_s10 = sshll.u32 %s1509_s9, 4  ;;  %p1462_p0 = scmp.ne.s32.totalorder %s1706_s1, %s1461_s13  ;;  %s17_s10 = int_to_ptr.vmem [resolvable:$true] %s16_s10 }
   0x3   :  { %p1465_p1 = scmp.lt.u32.totalorder %s1461_s13, %s1706_s1 }
   0x5   :  { %p1467_p2 = pnand %p1465_p1, %p1462_p0 }
   0x7   :  { %1470 = shalt.err (!%p1467_p2)
}
   0x8   :  { %s1471_s18 = scalar_lea.vmem %s17_s10, 1664  ;;  %p1476_p4 = scmp.lt.s32.totalorder %s17_s10, %s17_s10 }
   0x9   :  { %p1472_p3 = scmp.ne.s32.totalorder %s17_s10, %s1471_s18  ;;  %p1477_p5 = scmp.lt.s32.totalorder %s1471_s18, %s1471_s18 }
   0xb   :  { %p1478_p6 = por %p1477_p5, %p1476_p4 }
   0xd   :  { %p1479_p7 = pnand %p1478_p6, %p1472_p3 }
   0xf   :  { %1482 = shalt.err (!%p1479_p7)
}
  0x10   :  { %s1510_s19 = smov 128   ;;  %s1511_s20 = smov 8  }
  0x11   :  { %22 = dma.hbm_to_vmem [thread:$0]  %s1706_s1, 1664, %s17_s10, [#allocation3], %s1510_s19, %s1510_s19, %s1511_s20  }
  0x12   :  { %1505 = dma.done.wait [#allocation3], 1664  }
  0x13   :  { %1506 = vsyncadd [#allocation3], 4294965632  ;;  %v1512_v0 = vmov 0   ;;  %v1513_v1 = vmov 0.0|0.0   ;;  %vm1514_vm0 = vmmov 0   ;;  %v1515_v2 = vmov 0.0  }
  0x14   :  { %1408 = vset.pattern.permute.xlu0 %v1512_v0  ;;  %1343 = vmatprep.subr.bf16.mxu1 %v1513_v1  ;;  %v40_v3 = vld [vmem:[%s1705_s0] sm:$0xff]  ;;  %v41_v4 = vld [vmem:[%s1705_s0 + $0x8] sm:$0xff]  ;;  %v32_v7 = vld [vmem:[#allocation2 + $0x30] sm:$0xff]  ;;  %s1516_s0 = smov 64   ;;  %v42_v18 = vlaneseq  ;;  %vm56_vm1 = vcmask 261120   ;;  %s1517_s1 = smov 96  }
  0x15   :  { %1244 = vmatprep.mubr.msk.f32.mxu1 %vm1514_vm0, %v1515_v2  ;;  %v30_v5 = vld [vmem:[#allocation2 + $0x20] sm:$0xff]  ;;  %45 = vperm.xlu0 %1408, %v40_v3   ;;  %v31_v6 = vld [vmem:[#allocation2 + $0x28] sm:$0xff]  ;;  %v33_v8 = vld [vmem:[#allocation2 + $0x38] sm:$0xff]  ;;  %s1518_s27 = smov 32   ;;  %vm1121_vm4 = vcmask 1041408   ;;  %s1519_s28 = smov [#allocation5]  }
  0x16   :  { %v1556_v9 = vpack.c.bf16 %v31_v6, %v30_v5  ;;  %v26_v10 = vld [vmem:[#allocation2] sm:$0xff]  ;;  %v27_v11 = vld [vmem:[#allocation2 + $0x8] sm:$0xff]  ;;  %v28_v12 = vld [vmem:[#allocation2 + $0x10] sm:$0xff]  ;;  %v1559_v15 = vpack.c.bf16 %v33_v8, %v32_v7  ;;  %v43_v19 = vand.u32 127, %v42_v18  ;;  %s1143_s29 = sshll.u32 %s1519_s28, 4  ;;  %s1144_s29 = int_to_ptr.vmem [resolvable:$true] %s1143_s29 }
  0x17   :  { %v1335_v13 = vpack.c.bf16 %v27_v11, %v26_v10  ;;  %v29_v14 = vld [vmem:[#allocation2 + $0x18] sm:$0xff]  ;;  %v1157_v17 = vld [vmem:[#allocation2 + $0x61] ss:$0 sm:$0xff]  ;;  %s1483_s30 = scalar_lea.vmem %s1144_s29, 32  ;;  %p1488_p9 = scmp.lt.s32.totalorder %s1144_s29, %s1144_s29 }
  0x18   :  { %1345 = vmatpush3.bf16.msra.mxu1 %v1556_v9  ;;  %v1339_v16 = vpack.c.bf16 %v29_v14, %v28_v12  ;;  %223 = vrot.lane.b32.xlu1 %v1157_v17, %s1516_s0  ;;  %p1484_p8 = scmp.ne.s32.totalorder %s1144_s29, %s1483_s30  ;;  %p1489_p10 = scmp.lt.s32.totalorder %s1483_s30, %s1483_s30 }
  0x19   :  { %48 = vperm.xlu0 %1408, %v41_v4   ;;  %1346 = vmatprep.subr.bf16.mxu1 %v1513_v1 }
  0x1a   :  { %1336 = vmatprep.subr.bf16.mxu0 %v1335_v13  ;;  %p1490_p11 = por %p1489_p10, %p1488_p9 }
  0x1b   :  { %1338 = vmatpush3.bf16.msra.mxu0 %v1335_v13 }
  0x1c   :  { %1348 = vmatpush3.bf16.msra.mxu1 %v1559_v15  ;;  %1340 = vmatprep.subr.bf16.mxu0 %v1339_v16  ;;  %p1491_p12 = pnand %p1490_p11, %p1484_p8 }
  0x1d   :  { %1355 = vmatprep.subr.bf16.mxu1 %v1513_v1 }
  0x1f   :  { %1245 = vmatmul.mubr.f32.vlgmr.msra.gmra.mrb[0].mxu1 %v1515_v2  ;;  %1342 = vmatpush3.bf16.msra.mxu0 %v1339_v16 }
  0x20   :  { %1349 = vmatprep.subr.bf16.mxu0 %v1513_v1  ;;  %1357 = vmatpush3.bf16.msra.mxu1 %v1556_v9 }
  0x21   :  { %1358 = vmatprep.subr.bf16.mxu1 %v1513_v1  ;;  %1266 = vmatprep.mubr.msk.f32.mxu1 %vm1514_vm0, %v1515_v2 }
  0x24   :  { %1360 = vmatpush3.bf16.msra.mxu1 %v1559_v15 }
  0x25   :  { %1367 = vmatprep.subr.bf16.mxu1 %v1513_v1 }
  0x8a   :  { %v1583_v24 = vpop.permute.xlu1 %223 }
  0x94   :  { %v46_v20 = vpop.permute.xlu0 %45 }
  0x95   :  { %vm50_vm2 = vcmp.eq.s32.totalorder %v43_v19, %v46_v20 }
  0x96   :  { %v1152_v21 = vsel %vm50_vm2, 1.0, %v1515_v2 }
  0x97   :  { %1233 = vmatprep.mubr.msk.f32.mxu0 %vm56_vm1, %v1152_v21 }
  0x98   :  { %v49_v22 = vpop.permute.xlu0 %48 }
  0x99   :  { %vm51_vm3 = vcmp.eq.s32.totalorder %v43_v19, %v49_v22 }
  0x9a   :  { %v1153_v23 = vsel %vm51_vm3, 1.0, %v1515_v2 }
  0x9b   :  { %1234 = vmatmul.mubr.msk.f32.vlgmr.msra.gmra.mrb[0].mxu0 %vm56_vm1, %v1153_v23 }
  0x9c   :  { %1351 = vmatpush3.bf16.msra.mxu0 %v1556_v9  ;;  %1255 = vmatprep.mubr.msk.f32.mxu0 %vm1514_vm0, %v1515_v2 }
  0x9d   :  { %1352 = vmatprep.subr.bf16.mxu0 %v1513_v1 }
  0xa0   :  { %1354 = vmatpush3.bf16.msra.mxu0 %v1559_v15 }
  0xa1   :  { %1361 = vmatprep.subr.bf16.mxu0 %v1513_v1 }
  0xf2   :  { %v207_v25 = vpop.f32.mrb[0].mxu1 }
  0xf3   :  { %v1246_v26 = vpop.f32.mrb[1].mxu1  ;;  %v226_v27 = vadd.f32 %v1583_v24, %v207_v25 }
  0xf5   :  { %228 = vrot.lane.b32.xlu1 %v226_v27, %s1516_s0 }
 0x167   :  { %v229_v34 = vpop.permute.xlu1 %228 }
 0x16e   :  { %v1587_v28 = vpop.f32.mrb[0].mxu0 }
 0x16f   :  { %v1589_v29 = vpop.f32.mrb[1].mxu0 }
 0x170   :  { %v211_v30 = vadd.f32 %v207_v25, %v1589_v29 }
 0x172   :  { %v1156_v31 = vmul.f32 -1.442695, %v211_v30 }
 0x174   :  { %1409 = vpow2.f32 %v1156_v31 }
 0x17e   :  { %v1410_v32 = vpop.eup %1409 }
 0x17f   :  { %v215_v33 = vadd.f32 1.0, %v1410_v32 }
 0x181   :  { %1411 = vrcp.f32 %v215_v33 }
 0x18b   :  { %v1412_v35 = vpop.eup %1411 }
 0x18c   :  { %v231_v36 = vmul.f32 %v1412_v35, %v229_v34 }
 0x18e   :  { %233 = vrot.lane.b32.xlu0 %v231_v36, %s1516_s0 }
 0x200   :  { %v234_v37 = vpop.permute.xlu0 %233 }
 0x201   :  { %v236_v38 = vadd.f32 %v234_v37, %v1589_v29 }
 0x203   :  { %1413 = vtanh.f32 %v236_v38 }
 0x20d   :  { %v1414_v39 = vpop.eup %1413 }
 0x20e   :  { %v238_v40 = vsub.f32 0.0, %v1414_v39 }
 0x210   :  { %240 = vrot.lane.b32.xlu1 %v238_v40, %s1517_s1 }
 0x282   :  { %v241_v41 = vpop.permute.xlu1 %240 }
 0x283   :  { %v243_v42 = vmul.f32 %v1412_v35, %v241_v41 }
 0x285   :  { %245 = vrot.lane.b32.xlu0 %v243_v42, %s1518_s27 }
 0x2f7   :  { %v246_v43 = vpop.permute.xlu0 %245 }
 0x2f8   :  { %v248_v44 = vadd.f32 %v1414_v39, %v246_v43 }
 0x2fa   :  { %250 = vrot.lane.b32.xlu1 %v248_v44, %s1516_s0 }
 0x36c   :  { %v251_v45 = vpop.permute.xlu1 %250 }
 0x36d   :  { %1256 = vmatmul.mubr.msk.f32.vlgmr.msra.gmra.mrb[2].mxu0 %vm56_vm1, %v251_v45 }
 0x36e   :  { %1363 = vmatpush3.bf16.msra.mxu0 %v1556_v9  ;;  %1277 = vmatprep.mubr.msk.f32.mxu0 %vm1514_vm0, %v1515_v2 }
 0x36f   :  { %1364 = vmatprep.subr.bf16.mxu0 %v1513_v1 }
 0x372   :  { %1366 = vmatpush3.bf16.msra.mxu0 %v1559_v15 }
 0x373   :  { %1373 = vmatprep.subr.bf16.mxu0 %v1513_v1 }
 0x440   :  { %v320_v46 = vpop.f32.mrb[2].mxu0 }
 0x441   :  { %v325_v47 = vrot.slane %v320_v46, 6  ;;  %v334_v48 = vadd.f32 %v320_v46, %v1583_v24  ;;  %v1257_v49 = vpop.f32.mrb[3].mxu0 }
 0x443   :  { %v327_v50 = vadd.f32 %v325_v47, %v1589_v29  ;;  %v336_v51 = vrot.slane %v334_v48, 6 }
 0x445   :  { %337 = vrot.lane.b32.xlu0 %v336_v51, %s1516_s0  ;;  %v1159_v52 = vmul.f32 -1.442695, %v327_v50 }
 0x447   :  { %1415 = vpow2.f32 %v1159_v52 }
 0x451   :  { %v1416_v53 = vpop.eup %1415 }
 0x452   :  { %v331_v54 = vadd.f32 1.0, %v1416_v53 }
 0x454   :  { %1417 = vrcp.f32 %v331_v54 }
 0x45e   :  { %v1418_v55 = vpop.eup %1417 }
 0x4b7   :  { %v338_v56 = vpop.permute.xlu0 %337 }
 0x4b8   :  { %v340_v57 = vmul.f32 %v1418_v55, %v338_v56 }
 0x4ba   :  { %342 = vrot.lane.b32.xlu1 %v340_v57, %s1516_s0 }
 0x52c   :  { %v343_v58 = vpop.permute.xlu1 %342 }
 0x52d   :  { %v345_v59 = vadd.f32 %v343_v58, %v1589_v29 }
 0x52f   :  { %1419 = vtanh.f32 %v345_v59 }
 0x539   :  { %v1420_v60 = vpop.eup %1419 }
 0x53a   :  { %v348_v61 = vrot.slane %v1420_v60, 2 }
 0x53c   :  { %v350_v62 = vsub.f32 %v248_v44, %v348_v61 }
 0x53e   :  { %v352_v63 = vrot.slane %v350_v62, 6 }
 0x540   :  { %353 = vrot.lane.b32.xlu0 %v352_v63, %s1517_s1 }
 0x5b2   :  { %v354_v0 = vpop.permute.xlu0 %353 }
 0x5b3   :  { %v356_v3 = vmul.f32 %v1418_v55, %v354_v0 }
 0x5b5   :  { %358 = vrot.lane.b32.xlu1 %v356_v3, %s1518_s27 }
 0x627   :  { %v359_v4 = vpop.permute.xlu1 %358 }
 0x628   :  { %v361_v5 = vadd.f32 %v1420_v60, %v359_v4 }
 0x62a   :  { %v363_v6 = vrot.slane %v361_v5, 2 }
 0x62c   :  { %364 = vrot.lane.b32.xlu0 %v363_v6, %s1516_s0 }
 0x69e   :  { %v365_v7 = vpop.permute.xlu0 %364 }
 0x69f   :  { %1267 = vmatmul.mubr.msk.f32.vlgmr.msra.gmra.mrb[2].mxu1 %vm56_vm1, %v365_v7 }
 0x6a0   :  { %1369 = vmatpush3.bf16.msra.mxu1 %v1556_v9  ;;  %1288 = vmatprep.mubr.msk.f32.mxu1 %vm1514_vm0, %v1515_v2 }
 0x6a1   :  { %1370 = vmatprep.subr.bf16.mxu1 %v1513_v1 }
 0x6a4   :  { %1372 = vmatpush3.bf16.msra.mxu1 %v1559_v15 }
 0x6a5   :  { %1379 = vmatprep.subr.bf16.mxu1 %v1513_v1 }
 0x772   :  { %v434_v8 = vpop.f32.mrb[2].mxu1 }
 0x773   :  { %v439_v10 = vrot.slane %v434_v8, 4  ;;  %v448_v11 = vadd.f32 %v434_v8, %v1583_v24  ;;  %v1268_v12 = vpop.f32.mrb[3].mxu1 }
 0x775   :  { %v441_v13 = vadd.f32 %v439_v10, %v1589_v29  ;;  %v450_v14 = vrot.slane %v448_v11, 4 }
 0x777   :  { %451 = vrot.lane.b32.xlu1 %v450_v14, %s1516_s0  ;;  %v1161_v16 = vmul.f32 -1.442695, %v441_v13 }
 0x779   :  { %1421 = vpow2.f32 %v1161_v16 }
 0x783   :  { %v1422_v17 = vpop.eup %1421 }
 0x784   :  { %v445_v18 = vadd.f32 1.0, %v1422_v17 }
 0x786   :  { %1423 = vrcp.f32 %v445_v18 }
 0x790   :  { %v1424_v19 = vpop.eup %1423 }
 0x7e9   :  { %v452_v20 = vpop.permute.xlu1 %451 }
 0x7ea   :  { %v454_v21 = vmul.f32 %v1424_v19, %v452_v20 }
 0x7ec   :  { %456 = vrot.lane.b32.xlu0 %v454_v21, %s1516_s0 }
 0x85e   :  { %v457_v22 = vpop.permute.xlu0 %456 }
 0x85f   :  { %v459_v23 = vadd.f32 %v457_v22, %v1589_v29 }
 0x861   :  { %1425 = vtanh.f32 %v459_v23 }
 0x86b   :  { %v1426_v25 = vpop.eup %1425 }
 0x86c   :  { %v462_v26 = vrot.slane %v1426_v25, 2 }
 0x86e   :  { %v464_v27 = vsub.f32 %v361_v5, %v462_v26 }
 0x870   :  { %v466_v30 = vrot.slane %v464_v27, 6 }
 0x872   :  { %467 = vrot.lane.b32.xlu1 %v466_v30, %s1517_s1 }
 0x8e4   :  { %v468_v31 = vpop.permute.xlu1 %467 }
 0x8e5   :  { %v470_v32 = vmul.f32 %v1424_v19, %v468_v31 }
 0x8e7   :  { %472 = vrot.lane.b32.xlu0 %v470_v32, %s1518_s27 }
 0x959   :  { %v473_v33 = vpop.permute.xlu0 %472 }
 0x95a   :  { %v475_v34 = vadd.f32 %v1426_v25, %v473_v33 }
 0x95c   :  { %v477_v35 = vrot.slane %v475_v34, 4 }
 0x95e   :  { %478 = vrot.lane.b32.xlu1 %v477_v35, %s1516_s0 }
 0x9d0   :  { %v479_v36 = vpop.permute.xlu1 %478 }
 0x9d1   :  { %1278 = vmatmul.mubr.msk.f32.vlgmr.msra.gmra.mrb[4].mxu0 %vm56_vm1, %v479_v36 }
 0x9d2   :  { %1375 = vmatpush3.bf16.msra.mxu0 %v1556_v9  ;;  %1299 = vmatprep.mubr.msk.f32.mxu0 %vm1514_vm0, %v1515_v2 }
 0x9d3   :  { %1376 = vmatprep.subr.bf16.mxu0 %v1513_v1 }
 0x9d6   :  { %1378 = vmatpush3.bf16.msra.mxu0 %v1559_v15 }
 0x9d7   :  { %1385 = vmatprep.subr.bf16.mxu0 %v1513_v1 }
 0xaa4   :  { %v548_v37 = vpop.f32.mrb[4].mxu0 }
 0xaa5   :  { %v553_v38 = vrot.slane %v548_v37, 2  ;;  %v562_v39 = vadd.f32 %v548_v37, %v1583_v24  ;;  %v1279_v40 = vpop.f32.mrb[5].mxu0 }
 0xaa7   :  { %v555_v41 = vadd.f32 %v553_v38, %v1589_v29  ;;  %v564_v42 = vrot.slane %v562_v39, 2 }
 0xaa9   :  { %565 = vrot.lane.b32.xlu0 %v564_v42, %s1516_s0  ;;  %v1163_v43 = vmul.f32 -1.442695, %v555_v41 }
 0xaab   :  { %1427 = vpow2.f32 %v1163_v43 }
 0xab5   :  { %v1428_v44 = vpop.eup %1427 }
 0xab6   :  { %v559_v45 = vadd.f32 1.0, %v1428_v44 }
 0xab8   :  { %1429 = vrcp.f32 %v559_v45 }
 0xac2   :  { %v1430_v46 = vpop.eup %1429 }
 0xb1b   :  { %v566_v47 = vpop.permute.xlu0 %565 }
 0xb1c   :  { %v568_v48 = vmul.f32 %v1430_v46, %v566_v47 }
 0xb1e   :  { %570 = vrot.lane.b32.xlu1 %v568_v48, %s1516_s0 }
 0xb90   :  { %v571_v49 = vpop.permute.xlu1 %570 }
 0xb91   :  { %v573_v50 = vadd.f32 %v571_v49, %v1589_v29 }
 0xb93   :  { %1431 = vtanh.f32 %v573_v50 }
 0xb9d   :  { %v1432_v51 = vpop.eup %1431 }
 0xb9e   :  { %v576_v52 = vrot.slane %v1432_v51, 2 }
 0xba0   :  { %v578_v53 = vsub.f32 %v475_v34, %v576_v52 }
 0xba2   :  { %v580_v54 = vrot.slane %v578_v53, 6 }
 0xba4   :  { %581 = vrot.lane.b32.xlu0 %v580_v54, %s1517_s1 }
 0xc16   :  { %v582_v55 = vpop.permute.xlu0 %581 }
 0xc17   :  { %v584_v56 = vmul.f32 %v1430_v46, %v582_v55 }
 0xc19   :  { %586 = vrot.lane.b32.xlu1 %v584_v56, %s1518_s27 }
 0xc8b   :  { %v587_v57 = vpop.permute.xlu1 %586 }
 0xc8c   :  { %v589_v58 = vadd.f32 %v1432_v51, %v587_v57 }
 0xc8e   :  { %v591_v59 = vrot.slane %v589_v58, 6 }
 0xc90   :  { %592 = vrot.lane.b32.xlu0 %v591_v59, %s1516_s0 }
 0xd02   :  { %v593_v60 = vpop.permute.xlu0 %592 }
 0xd03   :  { %1289 = vmatmul.mubr.msk.f32.vlgmr.msra.gmra.mrb[4].mxu1 %vm56_vm1, %v593_v60 }
 0xd04   :  { %1381 = vmatpush3.bf16.msra.mxu1 %v1556_v9  ;;  %1310 = vmatprep.mubr.msk.f32.mxu1 %vm1514_vm0, %v1515_v2 }
 0xd05   :  { %1382 = vmatprep.subr.bf16.mxu1 %v1513_v1 }
 0xd08   :  { %1384 = vmatpush3.bf16.msra.mxu1 %v1559_v15 }
 0xd09   :  { %1391 = vmatprep.subr.bf16.mxu1 %v1513_v1 }
 0xdd6   :  { %v662_v29 = vpop.f32.mrb[4].mxu1 }
 0xdd7   :  { %v666_v61 = vadd.f32 %v1587_v28, %v662_v29  ;;  %v673_v62 = vadd.f32 %v662_v29, %v1583_v24  ;;  %v1290_v63 = vpop.f32.mrb[5].mxu1 }
 0xdd9   :  { %675 = vrot.lane.b32.xlu1 %v673_v62, %s1516_s0  ;;  %v1165_v0 = vmul.f32 -1.442695, %v666_v61 }
 0xddb   :  { %1433 = vpow2.f32 %v1165_v0 }
 0xde5   :  { %v1434_v3 = vpop.eup %1433 }
 0xde6   :  { %v670_v4 = vadd.f32 1.0, %v1434_v3 }
 0xde8   :  { %1435 = vrcp.f32 %v670_v4 }
 0xdf2   :  { %v1436_v5 = vpop.eup %1435 }
 0xe4b   :  { %v676_v6 = vpop.permute.xlu1 %675 }
 0xe4c   :  { %v678_v7 = vmul.f32 %v1436_v5, %v676_v6 }
 0xe4e   :  { %680 = vrot.lane.b32.xlu0 %v678_v7, %s1516_s0 }
 0xec0   :  { %v681_v8 = vpop.permute.xlu0 %680 }
 0xec1   :  { %v683_v10 = vadd.f32 %v1587_v28, %v681_v8 }
 0xec3   :  { %1437 = vtanh.f32 %v683_v10 }
 0xecd   :  { %v1438_v11 = vpop.eup %1437 }
 0xece   :  { %v686_v12 = vrot.slane %v1438_v11, 2 }
 0xed0   :  { %v688_v13 = vsub.f32 %v589_v58, %v686_v12 }
 0xed2   :  { %v690_v14 = vrot.slane %v688_v13, 6 }
 0xed4   :  { %691 = vrot.lane.b32.xlu1 %v690_v14, %s1517_s1 }
 0xf46   :  { %v692_v16 = vpop.permute.xlu1 %691 }
 0xf47   :  { %v694_v17 = vmul.f32 %v1436_v5, %v692_v16 }
 0xf49   :  { %696 = vrot.lane.b32.xlu0 %v694_v17, %s1518_s27 }
 0xfbb   :  { %v697_v18 = vpop.permute.xlu0 %696 }
 0xfbc   :  { %v699_v19 = vadd.f32 %v1438_v11, %v697_v18 }
 0xfbe   :  { %701 = vrot.lane.b32.xlu1 %v699_v19, %s1516_s0 }
0x1030   :  { %v702_v20 = vpop.permute.xlu1 %701 }
0x1031   :  { %1300 = vmatmul.mubr.msk.f32.vlgmr.msra.gmra.mrb[6].mxu0 %vm56_vm1, %v702_v20 }
0x1032   :  { %1387 = vmatpush3.bf16.msra.mxu0 %v1556_v9  ;;  %1321 = vmatprep.mubr.msk.f32.mxu0 %vm1514_vm0, %v1515_v2 }
0x1033   :  { %1388 = vmatprep.subr.bf16.mxu0 %v1513_v1 }
0x1036   :  { %1390 = vmatpush3.bf16.msra.mxu0 %v1559_v15 }
0x1104   :  { %v771_v21 = vpop.f32.mrb[6].mxu0 }
0x1105   :  { %v776_v22 = vrot.slane %v771_v21, 6  ;;  %v785_v23 = vadd.f32 %v771_v21, %v1583_v24  ;;  %v1301_v25 = vpop.f32.mrb[7].mxu0 }
0x1107   :  { %v778_v26 = vadd.f32 %v1587_v28, %v776_v22  ;;  %v787_v27 = vrot.slane %v785_v23, 6 }
0x1109   :  { %788 = vrot.lane.b32.xlu0 %v787_v27, %s1516_s0  ;;  %v1167_v30 = vmul.f32 -1.442695, %v778_v26  ;;  %v34_v26 = vld [vmem:[#allocation2 + $0x40] sm:$0xff]  ;;  %v35_v27 = vld [vmem:[#allocation2 + $0x48] sm:$0xff] }
0x110b   :  { %1439 = vpow2.f32 %v1167_v30  ;;  %v36_v30 = vld [vmem:[#allocation2 + $0x50] sm:$0xff] }
0x1115   :  { %v1440_v9 = vpop.eup %1439 }
0x1116   :  { %v782_v31 = vadd.f32 1.0, %v1440_v9  ;;  %v1392_v9 = vpack.c.bf16 %v35_v27, %v34_v26 }
0x1118   :  { %1441 = vrcp.f32 %v782_v31  ;;  %v37_v31 = vld [vmem:[#allocation2 + $0x58] sm:$0xff] }
0x1122   :  { %v1442_v32 = vpop.eup %1441 }
0x117b   :  { %v789_v33 = vpop.permute.xlu0 %788 }
0x117c   :  { %v791_v34 = vmul.f32 %v1442_v32, %v789_v33 }
0x117e   :  { %793 = vrot.lane.b32.xlu1 %v791_v34, %s1516_s0 }
0x11f0   :  { %v794_v15 = vpop.permute.xlu1 %793 }
0x11f1   :  { %v796_v35 = vadd.f32 %v1587_v28, %v794_v15 }
0x11f3   :  { %1443 = vtanh.f32 %v796_v35 }
0x11fd   :  { %v1444_v36 = vpop.eup %1443 }
0x11fe   :  { %v799_v37 = vrot.slane %v1444_v36, 2 }
0x1200   :  { %v801_v38 = vsub.f32 %v699_v19, %v799_v37  ;;  %v1172_v37 = vld [vmem:[#allocation2 + $0x60] ss:$0 sm:$0xff] }
0x1202   :  { %v803_v39 = vrot.slane %v801_v38, 6 }
0x1204   :  { %804 = vrot.lane.b32.xlu0 %v803_v39, %s1517_s1 }
0x1276   :  { %v805_v40 = vpop.permute.xlu0 %804 }
0x1277   :  { %v807_v41 = vmul.f32 %v1442_v32, %v805_v40  ;;  %v1395_v32 = vpack.c.bf16 %v37_v31, %v36_v30 }
0x1279   :  { %809 = vrot.lane.b32.xlu1 %v807_v41, %s1518_s27 }
0x12eb   :  { %v810_v42 = vpop.permute.xlu1 %809 }
0x12ec   :  { %v812_v43 = vadd.f32 %v1444_v36, %v810_v42 }
0x12ee   :  { %v814_v44 = vrot.slane %v812_v43, 2 }
0x12f0   :  { %815 = vrot.lane.b32.xlu0 %v814_v44, %s1516_s0 }
0x1362   :  { %v816_v45 = vpop.permute.xlu0 %815 }
0x1363   :  { %1311 = vmatmul.mubr.msk.f32.vlgmr.msra.gmra.mrb[6].mxu1 %vm56_vm1, %v816_v45 }
0x1364   :  { %1332 = vmatprep.mubr.msk.f32.mxu1 %vm1514_vm0, %v1515_v2  ;;  %1393 = vmatpush3.bf16.msra.mxu1 %v1392_v9 }
0x1365   :  { %1394 = vmatprep.subr.bf16.mxu1 %v1513_v1 }
0x1368   :  { %1396 = vmatpush3.bf16.msra.mxu1 %v1395_v32 }
0x1436   :  { %v885_v46 = vpop.f32.mrb[6].mxu1 }
0x1437   :  { %v890_v47 = vrot.slane %v885_v46, 4  ;;  %v899_v48 = vadd.f32 %v885_v46, %v1583_v24  ;;  %v1312_v49 = vpop.f32.mrb[7].mxu1 }
0x1439   :  { %v892_v50 = vadd.f32 %v1587_v28, %v890_v47  ;;  %v901_v51 = vrot.slane %v899_v48, 4 }
0x143b   :  { %902 = vrot.lane.b32.xlu1 %v901_v51, %s1516_s0  ;;  %v1169_v52 = vmul.f32 -1.442695, %v892_v50 }
0x143d   :  { %1445 = vpow2.f32 %v1169_v52 }
0x1447   :  { %v1446_v53 = vpop.eup %1445 }
0x1448   :  { %v896_v54 = vadd.f32 1.0, %v1446_v53 }
0x144a   :  { %1447 = vrcp.f32 %v896_v54 }
0x1454   :  { %v1448_v55 = vpop.eup %1447 }
0x14ad   :  { %v903_v56 = vpop.permute.xlu1 %902 }
0x14ae   :  { %v905_v57 = vmul.f32 %v1448_v55, %v903_v56 }
0x14b0   :  { %907 = vrot.lane.b32.xlu0 %v905_v57, %s1516_s0 }
0x1522   :  { %v908_v2 = vpop.permute.xlu0 %907 }
0x1523   :  { %v910_v58 = vadd.f32 %v1587_v28, %v908_v2 }
0x1525   :  { %1449 = vtanh.f32 %v910_v58 }
0x152f   :  { %v1450_v59 = vpop.eup %1449 }
0x1530   :  { %v913_v60 = vrot.slane %v1450_v59, 2 }
0x1532   :  { %v915_v29 = vsub.f32 %v812_v43, %v913_v60 }
0x1534   :  { %v917_v61 = vrot.slane %v915_v29, 6 }
0x1536   :  { %918 = vrot.lane.b32.xlu1 %v917_v61, %s1517_s1 }
0x15a8   :  { %v919_v62 = vpop.permute.xlu1 %918 }
0x15a9   :  { %v921_v63 = vmul.f32 %v1448_v55, %v919_v62 }
0x15ab   :  { %923 = vrot.lane.b32.xlu0 %v921_v63, %s1518_s27 }
0x161d   :  { %v924_v0 = vpop.permute.xlu0 %923 }
0x161e   :  { %v926_v3 = vadd.f32 %v1450_v59, %v924_v0 }
0x1620   :  { %v928_v4 = vrot.slane %v926_v3, 4 }
0x1622   :  { %929 = vrot.lane.b32.xlu1 %v928_v4, %s1516_s0 }
0x1694   :  { %v930_v5 = vpop.permute.xlu1 %929 }
0x1695   :  { %1322 = vmatmul.mubr.msk.f32.vlgmr.msra.gmra.mrb[8].mxu0 %vm56_vm1, %v930_v5 }
0x1768   :  { %v999_v6 = vpop.f32.mrb[8].mxu0 }
0x1769   :  { %v1004_v7 = vrot.slane %v999_v6, 2  ;;  %v1013_v8 = vadd.f32 %v999_v6, %v1583_v24  ;;  %v1323_v10 = vpop.f32.mrb[9].mxu0 }
0x176b   :  { %v1006_v11 = vadd.f32 %v1587_v28, %v1004_v7  ;;  %v1015_v12 = vrot.slane %v1013_v8, 2 }
0x176d   :  { %1016 = vrot.lane.b32.xlu0 %v1015_v12, %s1516_s0  ;;  %v1171_v13 = vmul.f32 -1.442695, %v1006_v11 }
0x176f   :  { %1451 = vpow2.f32 %v1171_v13 }
0x1779   :  { %v1452_v14 = vpop.eup %1451 }
0x177a   :  { %v1010_v16 = vadd.f32 1.0, %v1452_v14 }
0x177c   :  { %1453 = vrcp.f32 %v1010_v16 }
0x1786   :  { %v1454_v17 = vpop.eup %1453 }
0x17df   :  { %v1017_v18 = vpop.permute.xlu0 %1016 }
0x17e0   :  { %v1019_v19 = vmul.f32 %v1454_v17, %v1017_v18 }
0x17e2   :  { %1021 = vrot.lane.b32.xlu1 %v1019_v19, %s1516_s0 }
0x1854   :  { %v1022_v20 = vpop.permute.xlu1 %1021 }
0x1855   :  { %v1024_v21 = vadd.f32 %v1587_v28, %v1022_v20 }
0x1857   :  { %1455 = vtanh.f32 %v1024_v21 }
0x1861   :  { %v1456_v24 = vpop.eup %1455 }
0x1862   :  { %v1027_v22 = vrot.slane %v1456_v24, 2 }
0x1864   :  { %v1029_v23 = vsub.f32 %v926_v3, %v1027_v22 }
0x1866   :  { %v1031_v25 = vrot.slane %v1029_v23, 6 }
0x1868   :  { %1032 = vrot.lane.b32.xlu0 %v1031_v25, %s1517_s1 }
0x18da   :  { %v1033_v33 = vpop.permute.xlu0 %1032 }
0x18db   :  { %v1035_v34 = vmul.f32 %v1454_v17, %v1033_v33 }
0x18dd   :  { %1037 = vrot.lane.b32.xlu1 %v1035_v34, %s1518_s27 }
0x194f   :  { %v1038_v28 = vpop.permute.xlu1 %1037 }
0x1950   :  { %v1040_v15 = vadd.f32 %v1456_v24, %v1038_v28 }
0x1952   :  { %v1046_v35 = vrot.slane %v1040_v15, 6 }
0x1954   :  { %1047 = vrot.lane.b32.xlu0 %v1046_v35, %s1516_s0 }
0x19c6   :  { %v1048_v36 = vpop.permute.xlu0 %1047 }
0x19c7   :  { %1333 = vmatmul.mubr.msk.f32.vlgmr.msra.gmra.mrb[8].mxu1 %vm56_vm1, %v1048_v36 }
0x1a9a   :  { %v1117_v38 = vpop.f32.mrb[8].mxu1 }
0x1a9b   :  { %v1118_v39 = vadd.f32 %v1172_v37, %v1117_v38  ;;  %v1334_v40 = vpop.f32.mrb[9].mxu1 }
0x1a9d   :  { %v1122_v41 = vsel %vm1121_vm4, %v1118_v39, -inf }
0x1a9e   :  { %1123 = vmax.xlane.f32.xlu1 %v1122_v41 }
0x1b2b   :  { %v1124_v1 = vpop.xlane.xlu1 %1123 }
0x1b2c   :  { %v1125_v42 = vsub.f32 %v1118_v39, %v1124_v1 }
0x1b2e   :  { %v1126_v43 = vmul.f32 1.442695, %v1125_v42 }
0x1b30   :  { %1457 = vpow2.f32 %v1126_v43 }
0x1b3a   :  { %v1458_v44 = vpop.eup %1457 }
0x1b3b   :  { %v1128_v45 = vsel %vm1121_vm4, %v1458_v44, 0.0 }
0x1b3c   :  { %1129 = vadd.xlane.f32.xlu0 %v1128_v45 }
0x1bc9   :  { %v1130_v46 = vpop.xlane.xlu0 %1129 }
0x1bca   :  { %1459 = vrcp.f32 %v1130_v46 }
0x1bd4   :  { %v1460_v47 = vpop.eup %1459 }
0x1bd5   :  { %v1132_v48 = vmul.f32 %v1460_v47, %v1130_v46 }
0x1bd7   :  { %v1133_v49 = vsub.f32 2.0, %v1132_v48 }
0x1bd9   :  { %v1134_v50 = vmul.f32 %v1460_v47, %v1133_v49 }
0x1bdb   :  { %v1135_v51 = vmul.f32 %v1458_v44, %v1134_v50 }
0x1bdd   :  { %1136 = vst [vmem:[#allocation5] sm:$0x3] %v1135_v51 }
0x1bde   :  { %1494 = shalt.err (!%p1491_p12)
}
0x1bdf   :  { %s1495_s5 = scalar_lea.hbm %s1707_s2, 32 }
0x1be0   :  { %p1496_p13 = scmp.ne.s32.totalorder %s1707_s2, %s1495_s5  ;;  %p1499_p0 = scmp.lt.u32.totalorder %s1495_s5, %s1707_s2 }
0x1be2   :  { %p1501_p1 = pnand %p1499_p0, %p1496_p13 }
0x1be4   :  { %1504 = shalt.err (!%p1501_p1)
}
0x1be5   :  { %1146 = dma.vmem_to_hbm [thread:$0]  %s1144_s29, 32, %s1707_s2, [#allocation4]  }
0x1be6   :  { %1507 = dma.done.wait [#allocation4], 32  }
0x1be7   :  { %1508 = vsyncadd [#allocation4], 4294967264 }
0x1be8   :  { %1150 = vsyncpa [#allocation3], 1 }
0x1be9   :  { %1151 = vsyncpa [#allocation4], 1 }

</bundles_post_ra>
